<compile_context>
chip_gen: v7x
topology: tpu7x:2x2x1
jax: 0.10.0
libtpu: 0.0.40
codegen_flags: <defaults>
</compile_context>

<pallas_src>
import functools

import jax
import jax.numpy as jnp
from jax.experimental import pallas as pl
from jax.experimental.pallas import tpu as pltpu


def _round_up(x, m):
    return ((x + m - 1) // m) * m


def _cdiv(a, b):
    return (a + b - 1) // b


def _device_kind():
    try:
        return jax.devices()[0].device_kind.lower()
    except Exception:
        return ""


def critic_kernel(x_ref, w1_ref, b1_ref, w2_ref, b2_ref, wq_ref, bq_ref, q_ref,
                  *, epi_dtype):
    # fc1: bf16 MXU matmul, f32 accumulation.  Bias + ReLU in epi_dtype
    # (bf16 on v6e/v7x, f32 on v5e which has no bf16 VPU path).
    h1 = jnp.dot(x_ref[...], w1_ref[...], preferred_element_type=jnp.float32)
    h1 = jnp.maximum(h1.astype(epi_dtype) + b1_ref[...], 0).astype(jnp.bfloat16)

    # fc2 + ReLU
    h2 = jnp.dot(h1, w2_ref[...], preferred_element_type=jnp.float32)
    h2 = jnp.maximum(h2.astype(epi_dtype) + b2_ref[...], 0)

    # q head (output width 1): VPU multiply + row reduce instead of a 1-column MXU
    # matmul; reduction accumulates in f32, bias read from the SMEM scalar path.
    q = jnp.sum((h2 * wq_ref[...]).astype(jnp.float32), axis=-1, keepdims=True)
    q_ref[...] = q + bq_ref[0, 0]


@functools.partial(jax.jit, static_argnames=("block_m",))
def critic_forward(state, action, params, block_m=512):
    """Pallas implementation of CriticNetwork.forward(state, action) -> q [B, 1]."""
    w1, b1, w2, b2, wq, bq = params
    B = state.shape[0]
    d_in = state.shape[1] + action.shape[1]
    fc1 = w1.shape[1]
    fc2 = w2.shape[1]

    kind = _device_kind()
    # bf16 elementwise epilogue on v6e/v7x; keep f32 on v5e (no bf16 VPU).
    epi_dtype = jnp.float32 if "v5" in kind else jnp.bfloat16
    is_v7 = ("v7" in kind) or ("7x" in kind)

    # Fuse the torch.cat in the wrapper and feed bf16 directly to the kernel
    # (halves the per-tile input DMA bytes, drops in-kernel VPU casts).
    x = jnp.concatenate(
        [state.astype(jnp.bfloat16), action.astype(jnp.bfloat16)], axis=1)

    # Batch tiling: 128-aligned tiles balanced across cdiv(B, block_m) grid steps so
    # the last tile is not mostly padding.  On v7x keep >=2 grid steps at moderate B
    # so dimension_semantics=("parallel",) can shard tiles across its 2 TensorCores.
    if B <= 128:
        tile_m = _round_up(max(B, 8), 8)
        n_tiles = 1
    else:
        n_tiles = _cdiv(B, block_m)
        if is_v7 and B >= 256:
            n_tiles = max(n_tiles, 2)
        tile_m = _round_up(_cdiv(B, n_tiles), 128)
        n_tiles = _cdiv(B, tile_m)

    Bp = tile_m * n_tiles
    if Bp != B:
        x = jnp.pad(x, ((0, Bp - B), (0, 0)))

    # Biases / head weight in the epilogue dtype.
    b1e = b1.astype(epi_dtype)
    b2e = b2.astype(epi_dtype)
    wqe = wq.astype(epi_dtype)

    # Weights/biases use constant index_maps -> VMEM-resident across batch tiles.
    const = lambda shp: pl.BlockSpec(shp, lambda i: (0, 0))

    q = pl.pallas_call(
        functools.partial(critic_kernel, epi_dtype=epi_dtype),
        out_shape=jax.ShapeDtypeStruct((Bp, 1), jnp.float32),
        grid=(n_tiles,),
        in_specs=[
            pl.BlockSpec((tile_m, d_in), lambda i: (i, 0)),      # [state|action] tile, bf16
            const((d_in, fc1)),                                  # W1, bf16
            const((1, fc1)),                                     # b1 (epi dtype)
            const((fc1, fc2)),                                   # W2, bf16
            const((1, fc2)),                                     # b2 (epi dtype)
            const((1, fc2)),                                     # wq row vector (epi dtype)
            pl.BlockSpec(memory_space=pltpu.MemorySpace.SMEM),   # bq scalar
        ],
        out_specs=pl.BlockSpec((tile_m, 1), lambda i: (i, 0)),
        # Batch axis is independent -> "parallel" lets v7x shard tiles across 2 TCs.
        # Footprint (<2 MiB even at tile_m=1024) is far under every scoped-VMEM default,
        # so no vmem_limit override is needed.
        compiler_params=pltpu.CompilerParams(
            dimension_semantics=("parallel",),
        ),
    )(x, w1, b1e, w2, b2e, wqe, bq)

    if Bp != B:
        q = q[:B]
    return q
    # TODO(synk): cross-call persistent weights (P10-style VMEM residency across
    # pallas_calls) for the tiny-batch inference regime not implemented; weights are
    # DMA'd once per forward call.


def init_params(key, input_dims, n_actions, fc1_dims=256, fc2_dims=256):
    """Deterministic init matching nn.Linear default uniform(-1/sqrt(fan_in), ...)."""
    ds = input_dims[0]
    d_in = ds + n_actions

    def linear(k, fan_in, fan_out):
        kw, kb = jax.random.split(k)
        bound = 1.0 / jnp.sqrt(jnp.float32(fan_in))
        # weight stored as [in, out] (transposed vs torch) so the kernel does x @ W
        w = jax.random.uniform(kw, (fan_in, fan_out), jnp.float32, -bound, bound)
        b = jax.random.uniform(kb, (1, fan_out), jnp.float32, -bound, bound)
        return w, b

    k1, k2, k3 = jax.random.split(key, 3)
    w1, b1 = linear(k1, d_in, fc1_dims)
    w2, b2 = linear(k2, fc1_dims, fc2_dims)
    wq, bq = linear(k3, fc2_dims, 1)

    # bf16 weights for the MXU matmuls (f32 accumulation in-kernel); head weight as a
    # row vector for the VPU multiply+reduce; head bias as a (1,1) SMEM scalar.
    return (w1.astype(jnp.bfloat16), b1,
            w2.astype(jnp.bfloat16), b2,
            wq.reshape(1, fc2_dims), bq.reshape(1, 1))


def ref_forward(state, action, params):
    """Plain-JAX reference mirroring the kernel's mixed-precision policy."""
    w1, b1, w2, b2, wq, bq = params
    epi_dtype = jnp.float32 if "v5" in _device_kind() else jnp.bfloat16
    x = jnp.concatenate(
        [state.astype(jnp.bfloat16), action.astype(jnp.bfloat16)], axis=1)
    h1 = jnp.dot(x, w1, preferred_element_type=jnp.float32)
    h1 = jnp.maximum(h1.astype(epi_dtype) + b1.astype(epi_dtype), 0).astype(jnp.bfloat16)
    h2 = jnp.dot(h1, w2, preferred_element_type=jnp.float32)
    h2 = jnp.maximum(h2.astype(epi_dtype) + b2.astype(epi_dtype), 0)
    q = jnp.sum((h2 * wq.astype(epi_dtype)).astype(jnp.float32), axis=-1, keepdims=True)
    return q + bq[0, 0]


if __name__ == "__main__":
    key = jax.random.PRNGKey(0)
    kp, ks, ka, ks2, ka2 = jax.random.split(key, 5)

    input_dims = (8,)   # state dim
    n_actions = 2
    params = init_params(kp, input_dims, n_actions, fc1_dims=256, fc2_dims=256)

    # Small-batch case (matches the module's typical single-transition usage).
    batch = 2
    state = jax.random.normal(ks, (batch, input_dims[0]), jnp.float32)
    action = jax.random.normal(ka, (batch, n_actions), jnp.float32)
    q = jax.block_until_ready(critic_forward(state, action, params))
    q_ref = ref_forward(state, action, params)
    assert q.shape == (batch, 1), q.shape
    assert jnp.allclose(q, q_ref, atol=1e-3, rtol=1e-3), (q, q_ref)

    # Moderate-batch case exercising the multi-tile, padded grid path.
    batch2 = 600
    state2 = jax.random.normal(ks2, (batch2, input_dims[0]), jnp.float32)
    action2 = jax.random.normal(ka2, (batch2, n_actions), jnp.float32)
    q2 = jax.block_until_ready(critic_forward(state2, action2, params))
    q2_ref = ref_forward(state2, action2, params)
    assert q2.shape == (batch2, 1), q2.shape
    assert jnp.allclose(q2, q2_ref, atol=1e-3, rtol=1e-3)

    print("KERNEL_OK")
</pallas_src>

<mosaic_0001>
module attributes {stable_mosaic.version = 11 : i64} {
  func.func @critic_kernel(%arg0: i32, %arg1: memref<8x10xbf16, #tpu.memory_space<vmem>>, %arg2: memref<10x256xbf16, #tpu.memory_space<vmem>>, %arg3: memref<1x256xbf16, #tpu.memory_space<vmem>>, %arg4: memref<256x256xbf16, #tpu.memory_space<vmem>>, %arg5: memref<1x256xbf16, #tpu.memory_space<vmem>>, %arg6: memref<1x256xbf16, #tpu.memory_space<vmem>>, %arg7: memref<1x1xf32, #tpu.memory_space<smem>>, %arg8: memref<8x1xf32, #tpu.memory_space<vmem>>) attributes {dimension_semantics = [#tpu.dimension_semantics<parallel>], iteration_bounds = array<i64: 1>, scalar_prefetch = 0 : i64, scratch_operands = 0 : i64, tpu.core_type = #tpu.core_type<tc>, window_params = [{transform_indices = @transform_0, window_bounds = array<i64: 8, 10>}, {pipeline_mode = #tpu.pipeline_mode<synchronous>, transform_indices = @transform_1, window_bounds = array<i64: 10, 256>}, {pipeline_mode = #tpu.pipeline_mode<synchronous>, transform_indices = @transform_2, window_bounds = array<i64: 1, 256>}, {pipeline_mode = #tpu.pipeline_mode<synchronous>, transform_indices = @transform_3, window_bounds = array<i64: 256, 256>}, {pipeline_mode = #tpu.pipeline_mode<synchronous>, transform_indices = @transform_4, window_bounds = array<i64: 1, 256>}, {pipeline_mode = #tpu.pipeline_mode<synchronous>, transform_indices = @transform_5, window_bounds = array<i64: 1, 256>}, {transform_indices = @transform_6, window_bounds = array<i64: 1, 1>}, {transform_indices = @transform_7, window_bounds = array<i64: 8, 1>}]} {
    %c0 = arith.constant 0 : index
    %c0_0 = arith.constant 0 : index
    %0 = vector.load %arg1[%c0, %c0_0] : memref<8x10xbf16, #tpu.memory_space<vmem>>, vector<8x10xbf16>
    %c0_1 = arith.constant 0 : index
    %c0_2 = arith.constant 0 : index
    %1 = vector.load %arg2[%c0_1, %c0_2] : memref<10x256xbf16, #tpu.memory_space<vmem>>, vector<10x256xbf16>
    %cst = arith.constant dense<0.000000e+00> : vector<8x256xf32>
    %2 = tpu.matmul %0, %1, %cst {dimension_numbers = #tpu.dot_dimension_numbers<[1], [0], [0], [1], [0, 0, 1, 1], [], []>} : vector<8x10xbf16>, vector<10x256xbf16>, vector<8x256xf32> -> vector<8x256xf32>
    %3 = arith.truncf %2 : vector<8x256xf32> to vector<8x256xbf16>
    %c0_3 = arith.constant 0 : index
    %c0_4 = arith.constant 0 : index
    %4 = vector.load %arg3[%c0_3, %c0_4] : memref<1x256xbf16, #tpu.memory_space<vmem>>, vector<1x256xbf16>
    %5 = vector.broadcast %4 : vector<1x256xbf16> to vector<8x256xbf16>
    %6 = arith.addf %3, %5 : vector<8x256xbf16>
    %cst_5 = arith.constant 0.000000e+00 : bf16
    %7 = vector.broadcast %cst_5 : bf16 to vector<8x256xbf16>
    %8 = arith.maximumf %6, %7 : vector<8x256xbf16>
    %c0_6 = arith.constant 0 : index
    %c0_7 = arith.constant 0 : index
    %9 = vector.load %arg4[%c0_6, %c0_7] : memref<256x256xbf16, #tpu.memory_space<vmem>>, vector<256x256xbf16>
    %cst_8 = arith.constant dense<0.000000e+00> : vector<8x256xf32>
    %10 = tpu.matmul %8, %9, %cst_8 {dimension_numbers = #tpu.dot_dimension_numbers<[1], [0], [0], [1], [0, 0, 1, 1], [], []>} : vector<8x256xbf16>, vector<256x256xbf16>, vector<8x256xf32> -> vector<8x256xf32>
    %11 = arith.truncf %10 : vector<8x256xf32> to vector<8x256xbf16>
    %c0_9 = arith.constant 0 : index
    %c0_10 = arith.constant 0 : index
    %12 = vector.load %arg5[%c0_9, %c0_10] : memref<1x256xbf16, #tpu.memory_space<vmem>>, vector<1x256xbf16>
    %13 = vector.broadcast %12 : vector<1x256xbf16> to vector<8x256xbf16>
    %14 = arith.addf %11, %13 : vector<8x256xbf16>
    %cst_11 = arith.constant 0.000000e+00 : bf16
    %15 = vector.broadcast %cst_11 : bf16 to vector<8x256xbf16>
    %16 = arith.maximumf %14, %15 : vector<8x256xbf16>
    %c0_12 = arith.constant 0 : index
    %c0_13 = arith.constant 0 : index
    %17 = vector.load %arg6[%c0_12, %c0_13] : memref<1x256xbf16, #tpu.memory_space<vmem>>, vector<1x256xbf16>
    %18 = vector.broadcast %17 : vector<1x256xbf16> to vector<8x256xbf16>
    %19 = arith.mulf %16, %18 : vector<8x256xbf16>
    %20 = arith.extf %19 : vector<8x256xbf16> to vector<8x256xf32>
    %cst_14 = arith.constant dense<0.000000e+00> : vector<8xf32>
    %21 = vector.multi_reduction <add>, %20, %cst_14 [1] : vector<8x256xf32> to vector<8xf32>
    %22 = vector.shape_cast %21 : vector<8xf32> to vector<8x1xf32>
    %c0_15 = arith.constant 0 : index
    %c0_16 = arith.constant 0 : index
    %23 = memref.load %arg7[%c0_15, %c0_16] : memref<1x1xf32, #tpu.memory_space<smem>>
    %24 = vector.broadcast %23 : f32 to vector<8x1xf32>
    %25 = arith.addf %22, %24 : vector<8x1xf32>
    %c0_17 = arith.constant 0 : index
    %c0_18 = arith.constant 0 : index
    %26 = vector.load %arg8[%c0_17, %c0_18] : memref<8x1xf32, #tpu.memory_space<vmem>>, vector<8x1xf32>
    tpu.vector_store %arg8[%c0_17, %c0_18], %25 {strides = array<i32>} : memref<8x1xf32, #tpu.memory_space<vmem>>, vector<8x1xf32>,
    return
  }
  func.func @transform_0(%arg0: i32) -> (i32, i32) {
    %c0_i32 = arith.constant 0 : i32
    %c0_i32_0 = arith.constant 0 : i32
    return %arg0, %c0_i32 : i32, i32
  }
  func.func @transform_1(%arg0: i32) -> (i32, i32) {
    %c0_i32 = arith.constant 0 : i32
    %c0_i32_0 = arith.constant 0 : i32
    %c0_i32_1 = arith.constant 0 : i32
    return %c0_i32, %c0_i32_0 : i32, i32
  }
  func.func @transform_2(%arg0: i32) -> (i32, i32) {
    %c0_i32 = arith.constant 0 : i32
    %c0_i32_0 = arith.constant 0 : i32
    %c0_i32_1 = arith.constant 0 : i32
    return %c0_i32, %c0_i32_0 : i32, i32
  }
  func.func @transform_3(%arg0: i32) -> (i32, i32) {
    %c0_i32 = arith.constant 0 : i32
    %c0_i32_0 = arith.constant 0 : i32
    %c0_i32_1 = arith.constant 0 : i32
    return %c0_i32, %c0_i32_0 : i32, i32
  }
  func.func @transform_4(%arg0: i32) -> (i32, i32) {
    %c0_i32 = arith.constant 0 : i32
    %c0_i32_0 = arith.constant 0 : i32
    %c0_i32_1 = arith.constant 0 : i32
    return %c0_i32, %c0_i32_0 : i32, i32
  }
  func.func @transform_5(%arg0: i32) -> (i32, i32) {
    %c0_i32 = arith.constant 0 : i32
    %c0_i32_0 = arith.constant 0 : i32
    %c0_i32_1 = arith.constant 0 : i32
    return %c0_i32, %c0_i32_0 : i32, i32
  }
  func.func @transform_6(%arg0: i32) -> (i32, i32) {
    %c0_i32 = arith.constant 0 : i32
    %c0_i32_0 = arith.constant 0 : i32
    %c0_i32_1 = arith.constant 0 : i32
    return %c0_i32, %c0_i32_0 : i32, i32
  }
  func.func @transform_7(%arg0: i32) -> (i32, i32) {
    %c0_i32 = arith.constant 0 : i32
    %c0_i32_0 = arith.constant 0 : i32
    return %arg0, %c0_i32 : i32, i32
  }
}

</mosaic_0001>

<bundles_post_ra>
// kernel: critic_forward.1
= control target key start
LH: loop header
LB: loop body
LE: loop exit
PB: predicated region body
PF: predicated region fallthrough
CT: control target
= control target key end

     0   :  { %13 = vsyncpa [#allocation4], 0  ;;  %s600_s24 = smov [#allocation3]   ;;  %s686_s0 = inlined_call_operand.vmem [shape: bf16[8,10], index: 0, kind: input, shape index: {}]   ;;  %s687_s1 = inlined_call_operand.vmem [shape: bf16[10,256], index: 1, kind: input, shape index: {}]   ;;  %s688_s2 = inlined_call_operand.vmem [shape: bf16[1,256], index: 2, kind: input, shape index: {}]   ;;  %s689_s3 = inlined_call_operand.hbm [shape: bf16[256,256], index: 3, kind: input, shape index: {}]   ;;  %s690_s4 = inlined_call_operand.vmem [shape: bf16[1,256], index: 4, kind: input, shape index: {}]   ;;  %s691_s5 = inlined_call_operand.vmem [shape: bf16[1,256], index: 5, kind: input, shape index: {}]   ;;  %s692_s6 = inlined_call_operand.<no memory space> [shape: f32[1,1], index: 6, kind: input, shape index: {}]   ;;  %s693_s7 = inlined_call_operand.vmem [shape: f32[8,1], index: 7, kind: output, shape index: {}]  }
   0x1   :  { %s25_s25 = sshll.u32 %s600_s24, 4  ;;  %s576_s28 = scalar_lea.hbm %s689_s3, 4096  ;;  %s26_s25 = int_to_ptr.vmem [resolvable:$true] %s25_s25 }
   0x2   :  { %p577_p0 = scmp.ne.s32.totalorder %s689_s3, %s576_s28  ;;  %p580_p1 = scmp.lt.u32.totalorder %s576_s28, %s689_s3 }
   0x4   :  { %p582_p2 = pnand %p580_p1, %p577_p0 }
   0x6   :  { %585 = shalt.err (!%p582_p2)
}
   0x7   :  { %s586_s10 = scalar_lea.vmem %s26_s25, 4096  ;;  %p591_p4 = scmp.lt.s32.totalorder %s26_s25, %s26_s25 }
   0x8   :  { %p587_p3 = scmp.ne.s32.totalorder %s26_s25, %s586_s10  ;;  %p592_p5 = scmp.lt.s32.totalorder %s586_s10, %s586_s10 }
   0xa   :  { %p593_p6 = por %p592_p5, %p591_p4 }
   0xc   :  { %p594_p7 = pnand %p593_p6, %p587_p3 }
   0xe   :  { %597 = shalt.err (!%p594_p7)
}
   0xf   :  { %s601_s11 = smov 128   ;;  %s602_s12 = smov 8  }
  0x10   :  { %31 = dma.hbm_to_vmem [thread:$0]  %s689_s3, 4096, %s26_s25, [#allocation4], %s601_s11, %s601_s11, %s602_s12  }
  0x11   :  { %598 = dma.done.wait [#allocation4], 4096  }
  0x12   :  { %599 = vsyncadd [#allocation4], 4294963200  ;;  %v603_v0 = vmov 0   ;;  %vm57_vm0 = vcmask 1044480   ;;  %v528_v3 = vld [vmem:[#allocation3 + $0x4] ss:$8 sps:$4 sm:$0xff]   ;;  %v120_v39 = vlaneseq }
  0x13   :  { %96 = vmatprep.mubr.bf16.mxu0 %v603_v0  ;;  %v525_v1 = vld [vmem:[%s687_s1 + $0x4] ss:$8 sps:$4 sm:$0x1f]   ;;  %v527_v2 = vld [vmem:[%s687_s1] ss:$8 sps:$4 sm:$0x1f]   ;;  %341 = vmatprep.subr.bf16.mxu1 %v528_v3 }
  0x14   :  { %483 = vmatprep.subr.msk.bf16.mxu0 %vm57_vm0, %v525_v1  ;;  %v530_v4 = vld [vmem:[#allocation3] ss:$8 sps:$4 sm:$0xff]   ;;  %v59_v5 = vsel %vm57_vm0, %v527_v2, 0  ;;  %v531_v6 = vld [vmem:[#allocation3 + $0x14] ss:$8 sps:$4 sm:$0xff]   ;;  %vm53_vm1 = vcmask 80896  }
  0x15   :  { %65 = vmatpush1.bf16.msra.mxu0 %v59_v5  ;;  %v42_v7 = vld [vmem:[%s686_s0] sm:$0xf]  ;;  %342 = vmatpush1.bf16.msra.mxu1 %v530_v4  ;;  %v533_v8 = vld [vmem:[#allocation3 + $0x10] ss:$8 sps:$4 sm:$0xff]   ;;  %v534_v9 = vld [vmem:[#allocation3 + $0x24] ss:$8 sps:$4 sm:$0xff]  }
  0x16   :  { %343 = vmatprep.subr.bf16.mxu1 %v531_v6  ;;  %v536_v10 = vld [vmem:[#allocation3 + $0x20] ss:$8 sps:$4 sm:$0xff]   ;;  %v537_v11 = vld [vmem:[#allocation3 + $0x34] ss:$8 sps:$4 sm:$0xff]   ;;  %v539_v12 = vld [vmem:[#allocation3 + $0x30] ss:$8 sps:$4 sm:$0xff]  }
  0x17   :  { %v540_v13 = vld [vmem:[#allocation3 + $0x44] ss:$8 sps:$4 sm:$0xff]   ;;  %v542_v14 = vld [vmem:[#allocation3 + $0x40] ss:$8 sps:$4 sm:$0xff]   ;;  %v543_v15 = vld [vmem:[#allocation3 + $0x54] ss:$8 sps:$4 sm:$0xff]  }
  0x18   :  { %484 = vmatmul.mubr.msk.bf16.vlgmr.msra.gmra.mrb[0].mxu0 %vm53_vm1, %v42_v7  ;;  %v545_v16 = vld [vmem:[#allocation3 + $0x50] ss:$8 sps:$4 sm:$0xff]   ;;  %v546_v17 = vld [vmem:[#allocation3 + $0x64] ss:$8 sps:$4 sm:$0xff]   ;;  %v548_v18 = vld [vmem:[#allocation3 + $0x60] ss:$8 sps:$4 sm:$0xff]  }
  0x19   :  { %344 = vmatpush1.bf16.msra.mxu1 %v533_v8  ;;  %v549_v19 = vld [vmem:[#allocation3 + $0x74] ss:$8 sps:$4 sm:$0xff]   ;;  %v551_v20 = vld [vmem:[#allocation3 + $0x70] ss:$8 sps:$4 sm:$0xff]   ;;  %v552_v21 = vld [vmem:[#allocation3 + $0x84] ss:$8 sps:$4 sm:$0xff]  }
  0x1a   :  { %345 = vmatprep.subr.bf16.mxu1 %v534_v9  ;;  %v554_v22 = vld [vmem:[#allocation3 + $0x80] ss:$8 sps:$4 sm:$0xff]   ;;  %v555_v23 = vld [vmem:[#allocation3 + $0x94] ss:$8 sps:$4 sm:$0xff]   ;;  %v557_v24 = vld [vmem:[#allocation3 + $0x90] ss:$8 sps:$4 sm:$0xff]  }
  0x1b   :  { %v558_v25 = vld [vmem:[#allocation3 + $0xa4] ss:$8 sps:$4 sm:$0xff]   ;;  %v560_v26 = vld [vmem:[#allocation3 + $0xa0] ss:$8 sps:$4 sm:$0xff]   ;;  %v561_v27 = vld [vmem:[#allocation3 + $0xb4] ss:$8 sps:$4 sm:$0xff]  }
  0x1c   :  { %v563_v28 = vld [vmem:[#allocation3 + $0xb0] ss:$8 sps:$4 sm:$0xff]   ;;  %v564_v29 = vld [vmem:[#allocation3 + $0xc4] ss:$8 sps:$4 sm:$0xff]   ;;  %v566_v30 = vld [vmem:[#allocation3 + $0xc0] ss:$8 sps:$4 sm:$0xff]  }
  0x1d   :  { %346 = vmatpush1.bf16.msra.mxu1 %v536_v10  ;;  %v567_v31 = vld [vmem:[#allocation3 + $0xd4] ss:$8 sps:$4 sm:$0xff]   ;;  %v569_v32 = vld [vmem:[#allocation3 + $0xd0] ss:$8 sps:$4 sm:$0xff]   ;;  %v570_v33 = vld [vmem:[#allocation3 + $0xe4] ss:$8 sps:$4 sm:$0xff]  }
  0x1e   :  { %347 = vmatprep.subr.bf16.mxu1 %v537_v11  ;;  %v572_v34 = vld [vmem:[#allocation3 + $0xe0] ss:$8 sps:$4 sm:$0xff]   ;;  %v573_v35 = vld [vmem:[#allocation3 + $0xf4] ss:$8 sps:$4 sm:$0xff]   ;;  %v575_v36 = vld [vmem:[#allocation3 + $0xf0] ss:$8 sps:$4 sm:$0xff]  }
  0x1f   :  { %v604_v37 = vmov 1966171168   ;;  %v121_v41 = vshrl.u32 %v120_v39, 7  ;;  %vm474_vm2 = vcmask 7168  }
  0x20   :  { %v118_v38 = vunpack.c.l.s4 %v604_v37  ;;  %v485_v42 = vld.sshfl [vmem:[%s688_s2] sm:$0x11 pattern:$0x75316420] }
  0x21   :  { %348 = vmatpush1.bf16.msra.mxu1 %v539_v12  ;;  %v116_v44 = vcombine.high %v485_v42, %v485_v42  ;;  %v136_v48 = vsub.s32 0, %v121_v41  ;;  %v518_v62 = vld.sshfl [vmem:[%s690_s4] sm:$0x11 pattern:$0x75316420] }
  0x22   :  { %349 = vmatprep.subr.bf16.mxu1 %v540_v13  ;;  %v119_v40 = vunpack.c.0.s8 %v118_v38  ;;  %v393_v63 = vcombine.high %v518_v62, %v518_v62  ;;  %v519_v1 = vld.sshfl [vmem:[%s691_s5] sm:$0x11 pattern:$0x75316420] }
  0x23   :  { %v435_v4 = vcombine.high %v519_v1, %v519_v1 }
  0x24   :  { %v122_v43 = vsub.s32 %v119_v40, %v121_v41 }
  0x25   :  { %350 = vmatpush1.bf16.msra.mxu1 %v542_v14 }
  0x26   :  { %351 = vmatprep.subr.bf16.mxu1 %v543_v15  ;;  %v123_v45 = vrot.slane %v485_v42, %v122_v43  ;;  %v130_v46 = vrot.slane %v116_v44, %v122_v43  ;;  %v400_v2 = vrot.slane %v518_v62, %v122_v43  ;;  %v407_v3 = vrot.slane %v393_v63, %v122_v43 }
  0x27   :  { %v442_v6 = vrot.slane %v519_v1, %v122_v43  ;;  %v449_v8 = vrot.slane %v435_v4, %v122_v43 }
  0x28   :  { %v132_v47 = vpack.i.b16 %v123_v45, %v123_v45  ;;  %v139_v49 = vpack.i.b16 %v130_v46, %v130_v46  ;;  %v409_v5 = vpack.i.b16 %v400_v2, %v400_v2  ;;  %v416_v7 = vpack.i.b16 %v407_v3, %v407_v3 }
  0x29   :  { %352 = vmatpush1.bf16.msra.mxu1 %v545_v16  ;;  %v451_v10 = vpack.i.b16 %v442_v6, %v442_v6  ;;  %v458_v13 = vpack.i.b16 %v449_v8, %v449_v8 }
  0x2a   :  { %353 = vmatprep.subr.bf16.mxu1 %v546_v17  ;;  %v137_v50 = vrot.slane %v132_v47, %v136_v48  ;;  %v144_v52 = vrot.slane %v139_v49, %v136_v48  ;;  %v414_v9 = vrot.slane %v409_v5, %v136_v48  ;;  %v421_v12 = vrot.slane %v416_v7, %v136_v48 }
  0x2d   :  { %354 = vmatpush1.bf16.msra.mxu1 %v548_v18 }
  0x2e   :  { %355 = vmatprep.subr.bf16.mxu1 %v549_v19 }
  0x31   :  { %356 = vmatpush1.bf16.msra.mxu1 %v551_v20  ;;  %v456_v20 = vrot.slane %v451_v10, %v136_v48 }
  0x32   :  { %357 = vmatprep.subr.bf16.mxu1 %v552_v21 }
  0x35   :  { %358 = vmatpush1.bf16.msra.mxu1 %v554_v22  ;;  %v463_v22 = vrot.slane %v458_v13, %v136_v48 }
  0x36   :  { %359 = vmatprep.subr.bf16.mxu1 %v555_v23 }
  0x39   :  { %360 = vmatpush1.bf16.msra.mxu1 %v557_v24 }
  0x3a   :  { %361 = vmatprep.subr.bf16.mxu1 %v558_v25 }
  0x3d   :  { %362 = vmatpush1.bf16.msra.mxu1 %v560_v26 }
  0x3e   :  { %363 = vmatprep.subr.bf16.mxu1 %v561_v27 }
  0x41   :  { %364 = vmatpush1.bf16.msra.mxu1 %v563_v28 }
  0x42   :  { %365 = vmatprep.subr.bf16.mxu1 %v564_v29 }
  0x45   :  { %366 = vmatpush1.bf16.msra.mxu1 %v566_v30  ;;  %v472_v30 = vstv %s692_s6 }
  0x46   :  { %367 = vmatprep.subr.bf16.mxu1 %v567_v31 }
  0x49   :  { %368 = vmatpush1.bf16.msra.mxu1 %v569_v32 }
  0x4a   :  { %369 = vmatprep.subr.bf16.mxu1 %v570_v33 }
  0x4d   :  { %370 = vmatpush1.bf16.msra.mxu1 %v572_v34 }
  0x4e   :  { %371 = vmatprep.subr.bf16.mxu1 %v573_v35 }
  0x51   :  { %372 = vmatpush1.bf16.msra.mxu1 %v575_v36 }
  0xeb   :  { %v98_v51 = vpop.f32.mrb[0].mxu0 }
  0xec   :  { %v105_v53 = vpack.c.bf16 %v98_v51, %v98_v51  ;;  %v100_v54 = vpop.f32.mrb[1].mxu0 }
  0xed   :  { %v106_v55 = vpack.c.bf16 %v100_v54, %v100_v54  ;;  %v102_v56 = vpop.f32.mrb[2].mxu0 }
  0xee   :  { %v145_v57 = vadd.bf16 %v137_v50, %v105_v53  ;;  %v103_v58 = vpop.f32.mrb[3].mxu0 }
  0xef   :  { %v146_v59 = vadd.bf16 %v144_v52, %v106_v55 }
  0xf0   :  { %v147_v61 = vmax.bf16 %v603_v0, %v145_v57 }
  0xf1   :  { %v148_v60 = vmax.bf16 %v603_v0, %v146_v59 }
  0xf3   :  { %373 = vmatprep.mubr.bf16.mxu1 %v148_v60 }
  0xf4   :  { %374 = vmatmul.mubr.bf16.vlgmr.msra.gmra.mrb[0].mxu1 %v147_v61 }
 0x1c7   :  { %v375_v11 = vpop.f32.mrb[0].mxu1 }
 0x1c8   :  { %v382_v14 = vpack.c.bf16 %v375_v11, %v375_v11  ;;  %v377_v15 = vpop.f32.mrb[1].mxu1 }
 0x1c9   :  { %v383_v16 = vpack.c.bf16 %v377_v15, %v377_v15  ;;  %v379_v17 = vpop.f32.mrb[2].mxu1 }
 0x1ca   :  { %v422_v18 = vadd.bf16 %v414_v9, %v382_v14  ;;  %v380_v19 = vpop.f32.mrb[3].mxu1 }
 0x1cb   :  { %v423_v21 = vadd.bf16 %v421_v12, %v383_v16 }
 0x1cc   :  { %v424_v23 = vmax.bf16 %v603_v0, %v422_v18 }
 0x1cd   :  { %v425_v24 = vmax.bf16 %v603_v0, %v423_v21 }
 0x1ce   :  { %v464_v25 = vmul.bf16 %v456_v20, %v424_v23 }
 0x1cf   :  { %v465_v26 = vmul.bf16 %v463_v22, %v425_v24 }
 0x1d0   :  { %v466_v27 = vunpack.c.l.bf16 %v464_v25 }
 0x1d1   :  { %v467_v28 = vunpack.c.l.bf16 %v465_v26 }
 0x1d3   :  { %v468_v29 = vadd.f32 %v467_v28, %v466_v27 }
 0x1d5   :  { %469 = vadd.xlane.f32.xlu0 %v468_v29 }
 0x262   :  { %v470_v31 = vpop.xlane.xlu0 %469 }
 0x263   :  { %v473_v32 = vadd.f32 %v472_v30, %v470_v31 }
 0x265   :  { %475 = vst.msk [vmem:[%s693_s7] sm:$0xff] %vm474_vm2, %v473_v32 }
 0x266   :  { %480 = vsyncpa [#allocation4], 1 }

</bundles_post_ra>
